<compile_context>
chip_gen: v6e
topology: v6e:2x2x1
jax: 0.10.0
libtpu: 0.0.40
codegen_flags: <defaults>
</compile_context>

<pallas_src>
import functools
import math

import jax
import jax.numpy as jnp
from jax.experimental import pallas as pl
from jax.experimental.pallas import tpu as pltpu


SOFTPLUS_THRESHOLD = 20.0  # PyTorch F.softplus default (beta=1, threshold=20)


def _softplus(x):
    # beta == 1. exp(x) can't overflow in f32 for x <= 20 (exp(20) ~ 4.9e8),
    # and x > threshold takes the linear branch, matching PyTorch.
    return jnp.where(x > SOFTPLUS_THRESHOLD, x, jnp.log1p(jnp.exp(x)))


def toynet_kernel(x_ref, w1_ref, b1_ref, w2_ref, b2_ref, w3_ref, b3_ref, o_ref):
    x = x_ref[...]                                                   # (D_in, TB)
    h1 = jnp.dot(w1_ref[...], x, preferred_element_type=jnp.float32) + b1_ref[...]
    h1 = _softplus(h1)                                               # (H, TB)
    h2 = jnp.dot(w2_ref[...], h1, preferred_element_type=jnp.float32) + b2_ref[...]
    h2 = _softplus(h2)                                               # (H, TB)
    # Final Linear(H -> 1): VPU multiply + feature-axis (sublane) reduction;
    # avoids an M=1 MXU matmul and keeps the output lane-dense (1, TB).
    y = jnp.sum(h2 * w3_ref[...], axis=0, keepdims=True) + b3_ref[...]
    o_ref[...] = y.astype(o_ref.dtype)                               # (1, TB)


def _round_up(n, m):
    return ((n + m - 1) // m) * m


def _choose_tile(batch, tb_max):
    """Lane-dense batch tile (multiple of 256), adaptive for small batches.

    For batches >= 512, caps the tile so the grid has >= 2 steps -> on v7x the
    "parallel" batch axis shards across both TensorCores (harmless on v5e/v6e,
    which have a single TC).
    """
    b_min = _round_up(max(batch, 1), 256)
    tb = min(tb_max, b_min)
    if b_min >= 512 and pl.cdiv(b_min, tb) < 2:
        tb = _round_up(pl.cdiv(b_min, 2), 256)
    return tb


@functools.partial(jax.jit, static_argnames=("tb",))
def toynet_forward(x, params, *, tb=4096):
    """x: (B, D_in) row-major input. Returns (B, 1) like the PyTorch module."""
    w1, b1, w2, b2, w3, b3 = params
    B, d_in = x.shape
    h = w1.shape[0]

    tb_eff = _choose_tile(B, tb)
    b_pad = pl.cdiv(B, tb_eff) * tb_eff
    grid = (b_pad // tb_eff,)

    # Feature-major view of the input, zero-padded so the lane axis is a
    # multiple of the tile size (fuses into the jitted call path).
    x_fm = jnp.zeros((d_in, b_pad), dtype=jnp.float32).at[:, :B].set(x.T)

    param_bytes = 4 * (w1.size + b1.size + w2.size + b2.size + w3.size + b3.size)
    cost = pl.CostEstimate(
        flops=2 * b_pad * (d_in * h + h * h + h),
        transcendentals=4 * b_pad * h,              # 2 softplus layers x (exp + log1p)
        # x_fm (d_in, b_pad) and the (1, b_pad) output both live in sublane-
        # padded (8, b_pad) f32 tiles in HBM.
        bytes_accessed=4 * (8 * b_pad + 8 * b_pad) + param_bytes,
    )

    out = pl.pallas_call(
        toynet_kernel,
        out_shape=jax.ShapeDtypeStruct((1, b_pad), jnp.float32),
        grid=grid,
        in_specs=[
            pl.BlockSpec((d_in, tb_eff), lambda i: (0, i)),  # x tile, pipelined
            pl.BlockSpec((h, d_in), lambda i: (0, 0)),       # W1 resident
            pl.BlockSpec((h, 1),    lambda i: (0, 0)),       # b1 resident
            pl.BlockSpec((h, h),    lambda i: (0, 0)),       # W2 resident
            pl.BlockSpec((h, 1),    lambda i: (0, 0)),       # b2 resident
            pl.BlockSpec((h, 1),    lambda i: (0, 0)),       # W3 (stored (H, 1)) resident
            pl.BlockSpec((1, 1),    lambda i: (0, 0)),       # b3 resident
        ],
        out_specs=pl.BlockSpec((1, tb_eff), lambda i: (0, i)),
        compiler_params=pltpu.CompilerParams(
            dimension_semantics=("parallel",),
        ),
        cost_estimate=cost,
    )(x_fm, w1, b1, w2, b2, w3, b3)

    return out[0, :B].reshape(B, 1)


def _kaiming_uniform_linear(key, in_features, out_features):
    # Mirrors nn.init.kaiming_uniform_(weight, a=sqrt(5)) + PyTorch Linear bias
    # init. Weight stored exactly like PyTorch: (out_features, in_features).
    kw, kb = jax.random.split(key)
    gain = math.sqrt(2.0 / (1.0 + 5.0))              # a = sqrt(5)
    bound_w = gain * math.sqrt(3.0 / in_features)
    w = jax.random.uniform(kw, (out_features, in_features),
                           minval=-bound_w, maxval=bound_w, dtype=jnp.float32)
    bound_b = 1.0 / math.sqrt(in_features)
    b = jax.random.uniform(kb, (out_features, 1),
                           minval=-bound_b, maxval=bound_b, dtype=jnp.float32)
    return w, b


def init_toynet_params(key, input_dim=2, hidden_units=32):
    k1, k2, k3 = jax.random.split(key, 3)
    w1, b1 = _kaiming_uniform_linear(k1, input_dim, hidden_units)      # (H, D_in), (H, 1)
    w2, b2 = _kaiming_uniform_linear(k2, hidden_units, hidden_units)   # (H, H), (H, 1)
    w3t, b3 = _kaiming_uniform_linear(k3, hidden_units, 1)             # (1, H), (1, 1)
    w3 = w3t.T                                                         # store as (H, 1)
    return (w1, b1, w2, b2, w3, b3)


def toynet_reference(x, params):
    # Pure-JAX reference (row-major), matches PyTorch ToyNet.forward.
    w1, b1, w2, b2, w3, b3 = params
    h1 = _softplus(x @ w1.T + b1[:, 0])
    h2 = _softplus(h1 @ w2.T + b2[:, 0])
    return h2 @ w3 + b3[0]


if __name__ == "__main__":
    key = jax.random.PRNGKey(0)
    kx, kp = jax.random.split(key)

    batch = 8
    input_dim = 2
    hidden_units = 32

    x = jax.random.normal(kx, (batch, input_dim), dtype=jnp.float32)
    params = init_toynet_params(kp, input_dim=input_dim, hidden_units=hidden_units)

    y = toynet_forward(x, params)
    y = jax.block_until_ready(y)

    y_ref = toynet_reference(x, params)
    assert y.shape == (batch, 1)
    assert jnp.allclose(y, y_ref, atol=1e-5, rtol=1e-5)

    print("KERNEL_OK")
</pallas_src>

<mosaic_0001>
module attributes {stable_mosaic.version = 11 : i64} {
  func.func @toynet_kernel(%arg0: i32, %arg1: memref<2x256xf32, #tpu.memory_space<vmem>>, %arg2: memref<32x2xf32, #tpu.memory_space<vmem>>, %arg3: memref<32x1xf32, #tpu.memory_space<vmem>>, %arg4: memref<32x32xf32, #tpu.memory_space<vmem>>, %arg5: memref<32x1xf32, #tpu.memory_space<vmem>>, %arg6: memref<32x1xf32, #tpu.memory_space<vmem>>, %arg7: memref<1x1xf32, #tpu.memory_space<vmem>>, %arg8: memref<1x256xf32, #tpu.memory_space<vmem>>) attributes {dimension_semantics = [#tpu.dimension_semantics<parallel>], iteration_bounds = array<i64: 1>, scalar_prefetch = 0 : i64, scratch_operands = 0 : i64, tpu.core_type = #tpu.core_type<tc>, window_params = [{transform_indices = @transform_0, window_bounds = array<i64: 2, 256>}, {pipeline_mode = #tpu.pipeline_mode<synchronous>, transform_indices = @transform_1, window_bounds = array<i64: 32, 2>}, {pipeline_mode = #tpu.pipeline_mode<synchronous>, transform_indices = @transform_2, window_bounds = array<i64: 32, 1>}, {pipeline_mode = #tpu.pipeline_mode<synchronous>, transform_indices = @transform_3, window_bounds = array<i64: 32, 32>}, {pipeline_mode = #tpu.pipeline_mode<synchronous>, transform_indices = @transform_4, window_bounds = array<i64: 32, 1>}, {pipeline_mode = #tpu.pipeline_mode<synchronous>, transform_indices = @transform_5, window_bounds = array<i64: 32, 1>}, {pipeline_mode = #tpu.pipeline_mode<synchronous>, transform_indices = @transform_6, window_bounds = array<i64: 1, 1>}, {transform_indices = @transform_7, window_bounds = array<i64: 1, 256>}]} {
    %c0 = arith.constant 0 : index
    %c0_0 = arith.constant 0 : index
    %0 = vector.load %arg1[%c0, %c0_0] : memref<2x256xf32, #tpu.memory_space<vmem>>, vector<2x256xf32>
    %c0_1 = arith.constant 0 : index
    %c0_2 = arith.constant 0 : index
    %1 = vector.load %arg2[%c0_1, %c0_2] : memref<32x2xf32, #tpu.memory_space<vmem>>, vector<32x2xf32>
    %cst = arith.constant dense<0.000000e+00> : vector<32x256xf32>
    %2 = tpu.matmul %1, %0, %cst {dimension_numbers = #tpu.dot_dimension_numbers<[1], [0], [0], [1], [0, 0, 1, 1], [], []>} : vector<32x2xf32>, vector<2x256xf32>, vector<32x256xf32> -> vector<32x256xf32>
    %c0_3 = arith.constant 0 : index
    %c0_4 = arith.constant 0 : index
    %3 = vector.load %arg3[%c0_3, %c0_4] : memref<32x1xf32, #tpu.memory_space<vmem>>, vector<32x1xf32>
    %4 = vector.broadcast %3 : vector<32x1xf32> to vector<32x256xf32>
    %5 = arith.addf %2, %4 : vector<32x256xf32>
    %cst_5 = arith.constant 2.000000e+01 : f32
    %6 = vector.broadcast %cst_5 : f32 to vector<32x256xf32>
    %7 = arith.cmpf ogt, %5, %6 : vector<32x256xf32>
    %8 = math.exp %5 : vector<32x256xf32>
    %9 = math.log1p %8 : vector<32x256xf32>
    %10 = arith.select %7, %5, %9 : vector<32x256xi1>, vector<32x256xf32>
    %c0_6 = arith.constant 0 : index
    %c0_7 = arith.constant 0 : index
    %11 = vector.load %arg4[%c0_6, %c0_7] : memref<32x32xf32, #tpu.memory_space<vmem>>, vector<32x32xf32>
    %cst_8 = arith.constant dense<0.000000e+00> : vector<32x256xf32>
    %12 = tpu.matmul %11, %10, %cst_8 {dimension_numbers = #tpu.dot_dimension_numbers<[1], [0], [0], [1], [0, 0, 1, 1], [], []>} : vector<32x32xf32>, vector<32x256xf32>, vector<32x256xf32> -> vector<32x256xf32>
    %c0_9 = arith.constant 0 : index
    %c0_10 = arith.constant 0 : index
    %13 = vector.load %arg5[%c0_9, %c0_10] : memref<32x1xf32, #tpu.memory_space<vmem>>, vector<32x1xf32>
    %14 = vector.broadcast %13 : vector<32x1xf32> to vector<32x256xf32>
    %15 = arith.addf %12, %14 : vector<32x256xf32>
    %cst_11 = arith.constant 2.000000e+01 : f32
    %16 = vector.broadcast %cst_11 : f32 to vector<32x256xf32>
    %17 = arith.cmpf ogt, %15, %16 : vector<32x256xf32>
    %18 = math.exp %15 : vector<32x256xf32>
    %19 = math.log1p %18 : vector<32x256xf32>
    %20 = arith.select %17, %15, %19 : vector<32x256xi1>, vector<32x256xf32>
    %c0_12 = arith.constant 0 : index
    %c0_13 = arith.constant 0 : index
    %21 = vector.load %arg6[%c0_12, %c0_13] : memref<32x1xf32, #tpu.memory_space<vmem>>, vector<32x1xf32>
    %22 = vector.broadcast %21 : vector<32x1xf32> to vector<32x256xf32>
    %23 = arith.mulf %20, %22 : vector<32x256xf32>
    %cst_14 = arith.constant dense<0.000000e+00> : vector<256xf32>
    %24 = vector.multi_reduction <add>, %23, %cst_14 [0] : vector<32x256xf32> to vector<256xf32>
    %25 = vector.shape_cast %24 : vector<256xf32> to vector<1x256xf32>
    %c0_15 = arith.constant 0 : index
    %c0_16 = arith.constant 0 : index
    %26 = vector.load %arg7[%c0_15, %c0_16] : memref<1x1xf32, #tpu.memory_space<vmem>>, vector<1x1xf32>
    %27 = vector.broadcast %26 : vector<1x1xf32> to vector<1x256xf32>
    %28 = arith.addf %25, %27 : vector<1x256xf32>
    %c0_17 = arith.constant 0 : index
    %c0_18 = arith.constant 0 : index
    %29 = vector.load %arg8[%c0_17, %c0_18] : memref<1x256xf32, #tpu.memory_space<vmem>>, vector<1x256xf32>
    tpu.vector_store %arg8[%c0_17, %c0_18], %28 {strides = array<i32>} : memref<1x256xf32, #tpu.memory_space<vmem>>, vector<1x256xf32>,
    return
  }
  func.func @transform_0(%arg0: i32) -> (i32, i32) {
    %c0_i32 = arith.constant 0 : i32
    %c0_i32_0 = arith.constant 0 : i32
    return %c0_i32, %arg0 : i32, i32
  }
  func.func @transform_1(%arg0: i32) -> (i32, i32) {
    %c0_i32 = arith.constant 0 : i32
    %c0_i32_0 = arith.constant 0 : i32
    %c0_i32_1 = arith.constant 0 : i32
    return %c0_i32, %c0_i32_0 : i32, i32
  }
  func.func @transform_2(%arg0: i32) -> (i32, i32) {
    %c0_i32 = arith.constant 0 : i32
    %c0_i32_0 = arith.constant 0 : i32
    %c0_i32_1 = arith.constant 0 : i32
    return %c0_i32, %c0_i32_0 : i32, i32
  }
  func.func @transform_3(%arg0: i32) -> (i32, i32) {
    %c0_i32 = arith.constant 0 : i32
    %c0_i32_0 = arith.constant 0 : i32
    %c0_i32_1 = arith.constant 0 : i32
    return %c0_i32, %c0_i32_0 : i32, i32
  }
  func.func @transform_4(%arg0: i32) -> (i32, i32) {
    %c0_i32 = arith.constant 0 : i32
    %c0_i32_0 = arith.constant 0 : i32
    %c0_i32_1 = arith.constant 0 : i32
    return %c0_i32, %c0_i32_0 : i32, i32
  }
  func.func @transform_5(%arg0: i32) -> (i32, i32) {
    %c0_i32 = arith.constant 0 : i32
    %c0_i32_0 = arith.constant 0 : i32
    %c0_i32_1 = arith.constant 0 : i32
    return %c0_i32, %c0_i32_0 : i32, i32
  }
  func.func @transform_6(%arg0: i32) -> (i32, i32) {
    %c0_i32 = arith.constant 0 : i32
    %c0_i32_0 = arith.constant 0 : i32
    %c0_i32_1 = arith.constant 0 : i32
    return %c0_i32, %c0_i32_0 : i32, i32
  }
  func.func @transform_7(%arg0: i32) -> (i32, i32) {
    %c0_i32 = arith.constant 0 : i32
    %c0_i32_0 = arith.constant 0 : i32
    return %c0_i32, %arg0 : i32, i32
  }
}

</mosaic_0001>

<bundles_post_ra>
// kernel: toynet_forward.1
= control target key start
LH: loop header
LB: loop body
LE: loop exit
PB: predicated region body
PF: predicated region fallthrough
CT: control target
= control target key end

     0   :  { %vm79_vm0 = vcmask 1041408   ;;  %v680_v1 = vmov 0.0   ;;  %v681_v2 = vmov 0   ;;  %vm66_vm1 = vcmask 15360   ;;  %s1048_s0 = inlined_call_operand.vmem [shape: f32[2,256], index: 0, kind: input, shape index: {}]   ;;  %s1049_s1 = inlined_call_operand.vmem [shape: f32[32,2], index: 1, kind: input, shape index: {}]   ;;  %s1050_s2 = inlined_call_operand.vmem [shape: f32[32,1], index: 2, kind: input, shape index: {}]   ;;  %s1051_s6 = inlined_call_operand.<no memory space> [shape: f32[1,1], index: 6, kind: input, shape index: {}]   ;;  %s1052_s4 = inlined_call_operand.vmem [shape: f32[32,1], index: 4, kind: input, shape index: {}]   ;;  %s1053_s5 = inlined_call_operand.vmem [shape: f32[32,1], index: 5, kind: input, shape index: {}]   ;;  %s1054_s3 = inlined_call_operand.vmem [shape: f32[32,32], index: 3, kind: input, shape index: {}]   ;;  %s1055_s7 = inlined_call_operand.vmem [shape: f32[1,256], index: 7, kind: output, shape index: {}]  }
   0x1   :  { %v600_v0 = vld.sshfl [vmem:[%s1048_s0] sm:$0x33 pattern:$0x76325410]  ;;  %148 = vmatprep.mubr.f32.mxu0 %v680_v1  ;;  %614 = vset.pattern.permute.xlu0 %v681_v2  ;;  %v12_v3 = vstv %s1051_s6  ;;  %v36_v5 = vld [vmem:[%s1050_s2 + $0x18] sm:$0xff]  ;;  %v34_v7 = vld [vmem:[%s1050_s2 + $0x8] sm:$0xff] }
   0x2   :  { %v65_v4 = vcombine.high %v600_v0, %v600_v0  ;;  %615 = vset.pattern.permute.xlu1 %v681_v2  ;;  %13 = vst [vmem:[#allocation2] sm:$0x1] %v12_v3  ;;  %382 = vmatprep.mubr.f32.mxu1 %v680_v1  ;;  %v29_v6 = vld [vmem:[%s1049_s1] sm:$0xff]  ;;  %v35_v8 = vld [vmem:[%s1050_s2 + $0x10] sm:$0xff]  ;;  %v30_v10 = vld [vmem:[%s1049_s1 + $0x8] sm:$0xff] }
   0x3   :  { %54 = vperm.xlu0 %614, %v36_v5   ;;  %44 = vperm.xlu1 %615, %v34_v7   ;;  %v33_v9 = vld [vmem:[%s1050_s2] sm:$0xff]  ;;  %v282_v12 = vld [vmem:[%s1052_s4 + $0x8] sm:$0xff]  ;;  %v31_v13 = vld [vmem:[%s1049_s1 + $0x10] sm:$0xff] }
   0x4   :  { %601 = vmatprep.subr.msk.mxu0 %vm79_vm0, %v65_v4  ;;  %v281_v11 = vld [vmem:[%s1052_s4] sm:$0xff]  ;;  %v283_v14 = vld [vmem:[%s1052_s4 + $0x10] sm:$0xff]  ;;  %v284_v15 = vld [vmem:[%s1052_s4 + $0x18] sm:$0xff] }
   0x5   :  { %602 = vmatpush1.msk.msra.mxu0 %vm79_vm0, %v600_v0  ;;  %v32_v16 = vld [vmem:[%s1049_s1 + $0x18] sm:$0xff]  ;;  %v511_v17 = vld [vmem:[%s1053_s5] sm:$0xff]  ;;  %v512_v18 = vld [vmem:[%s1053_s5 + $0x8] sm:$0xff] }
   0x6   :  { %603 = vmatmul.mubr.msk.f32.vlgmr.msra.gmra.mxu0 %vm66_vm1, %v29_v6  ;;  %v513_v19 = vld [vmem:[%s1053_s5 + $0x10] sm:$0xff]  ;;  %v514_v20 = vld [vmem:[%s1053_s5 + $0x18] sm:$0xff] }
   0x7   :  { %154 = vmatprep.mubr.f32.mxu0 %v680_v1  ;;  %49 = vperm.xlu0 %614, %v35_v8  }
   0x8   :  { %39 = vperm.xlu1 %615, %v33_v9  }
   0x9   :  { %v561_v21 = vld [vmem:[#allocation2] sm:$0x1] }
   0xa   :  { %604 = vmatmul.mubr.msk.f32.gmra.mxu0 %vm66_vm1, %v30_v10 }
   0xb   :  { %160 = vmatprep.mubr.f32.mxu0 %v680_v1  ;;  %287 = vperm.xlu0 %614, %v281_v11  }
   0xc   :  { %292 = vperm.xlu1 %615, %v282_v12  }
   0xe   :  { %605 = vmatmul.mubr.msk.f32.gmra.mxu0 %vm66_vm1, %v31_v13 }
   0xf   :  { %166 = vmatprep.mubr.f32.mxu0 %v680_v1  ;;  %297 = vperm.xlu0 %614, %v283_v14  }
  0x10   :  { %302 = vperm.xlu1 %615, %v284_v15  }
  0x12   :  { %606 = vmatmul.mubr.msk.f32.gmra.mxu0 %vm66_vm1, %v32_v16 }
  0x13   :  { %517 = vperm.xlu0 %614, %v511_v17  }
  0x14   :  { %522 = vperm.xlu1 %615, %v512_v18  }
  0x17   :  { %527 = vperm.xlu0 %614, %v513_v19  }
  0x18   :  { %532 = vperm.xlu1 %615, %v514_v20  }
  0x1b   :  { %564 = vperm.xlu0 %614, %v561_v21  }
  0x7e   :  { %v45_v22 = vpop.permute.xlu1 %44  ;;  %v55_v24 = vpop.permute.xlu0 %54 }
  0x82   :  { %v50_v33 = vpop.permute.xlu0 %49 }
  0x83   :  { %v40_v25 = vpop.permute.xlu1 %39 }
  0xc6   :  { %v150_v23 = vpop.f32.mrf.mxu0 }
  0xc7   :  { %v795_v34 = vadd.f32 %v150_v23, %v40_v25 }
  0xc8   :  { %v152_v26 = vpop.f32.mrf.mxu0 }
  0xc9   :  { %v788_v27 = vadd.f32 %v152_v26, %v40_v25  ;;  %v181_v42 = vmul.f32 1.442695, %v795_v34  ;;  %vm173_vm1 = vcmp.gt.f32.partialorder %v795_v34, 20.0 }
  0xca   :  { %v156_v28 = vpop.f32.mrf.mxu0 }
  0xcb   :  { %v183_v29 = vmul.f32 1.442695, %v788_v27  ;;  %v791_v30 = vadd.f32 %v156_v28, %v45_v22  ;;  %vm174_vm0 = vcmp.gt.f32.partialorder %v788_v27, 20.0 }
  0xcc   :  { %v158_v31 = vpop.f32.mrf.mxu0 }
  0xcd   :  { %v793_v32 = vadd.f32 %v158_v31, %v45_v22  ;;  %616 = vpow2.f32 %v183_v29  ;;  %v185_v38 = vmul.f32 1.442695, %v791_v30  ;;  %vm175_vm15 = vcmp.gt.f32.partialorder %v791_v30, 20.0 }
  0xce   :  { %v162_v35 = vpop.f32.mrf.mxu0 }
  0xcf   :  { %v187_v36 = vmul.f32 1.442695, %v793_v32  ;;  %v798_v37 = vadd.f32 %v162_v35, %v50_v33  ;;  %vm176_vm13 = vcmp.gt.f32.partialorder %v793_v32, 20.0 }
  0xd0   :  { %v164_v39 = vpop.f32.mrf.mxu0 }
  0xd1   :  { %618 = vpow2.f32 %v187_v36  ;;  %v189_v40 = vmul.f32 1.442695, %v798_v37  ;;  %v802_v41 = vadd.f32 %v164_v39, %v50_v33  ;;  %vm177_vm5 = vcmp.gt.f32.partialorder %v798_v37, 20.0 }
  0xd2   :  { %v168_v43 = vpop.f32.mrf.mxu0 }
  0xd3   :  { %620 = vpow2.f32 %v189_v40  ;;  %v191_v44 = vmul.f32 1.442695, %v802_v41  ;;  %v806_v45 = vadd.f32 %v168_v43, %v55_v24  ;;  %vm178_vm4 = vcmp.gt.f32.partialorder %v802_v41, 20.0 }
  0xd4   :  { %622 = vpow2.f32 %v185_v38  ;;  %v170_v46 = vpop.f32.mrf.mxu0 }
  0xd5   :  { %624 = vpow2.f32 %v191_v44  ;;  %v193_v47 = vmul.f32 1.442695, %v806_v45  ;;  %v809_v48 = vadd.f32 %v170_v46, %v55_v24  ;;  %vm179_vm3 = vcmp.gt.f32.partialorder %v806_v45, 20.0 }
  0xd6   :  { %626 = vpow2.f32 %v181_v42 }
  0xd7   :  { %628 = vpow2.f32 %v193_v47  ;;  %v195_v49 = vmul.f32 1.442695, %v809_v48  ;;  %vm180_vm2 = vcmp.gt.f32.partialorder %v809_v48, 20.0 }
  0xd9   :  { %630 = vpow2.f32 %v195_v49 }
  0xda   :  { %v812_v50 = vpop.eup %616 }
  0xdb   :  { %v206_v52 = vadd.f32 1.0, %v812_v50  ;;  %v209_v8 = vmul.f32 -0.5, %v812_v50  ;;  %v212_v17 = vand.u32 2147483647, %v812_v50 }
  0xdd   :  { %632 = vlog2.f32 %v206_v52  ;;  %v210_v28 = vadd.f32 1.0, %v209_v8  ;;  %vm890_vm12 = vcmp.lt.f32.partialorder %v212_v17, 0.0004427343 }
  0xde   :  { %v814_v51 = vpop.eup %618 }
  0xdf   :  { %v224_v54 = vadd.f32 1.0, %v814_v51  ;;  %v227_v11 = vmul.f32 -0.5, %v814_v51  ;;  %v230_v12 = vand.u32 2147483647, %v814_v51 }
  0xe0   :  { %v817_v53 = vpop.eup %620 }
  0xe1   :  { %v820_v55 = vpop.eup %622  ;;  %v233_v57 = vadd.f32 1.0, %v817_v53  ;;  %634 = vlog2.f32 %v224_v54  ;;  %v236_v10 = vmul.f32 -0.5, %v817_v53  ;;  %v239_v15 = vand.u32 2147483647, %v817_v53 }
  0xe2   :  { %v822_v56 = vpop.eup %624  ;;  %v215_v61 = vadd.f32 1.0, %v820_v55  ;;  %v218_v7 = vmul.f32 -0.5, %v820_v55  ;;  %v221_v16 = vand.u32 2147483647, %v820_v55  ;;  %v228_v35 = vadd.f32 1.0, %v227_v11 }
  0xe3   :  { %v825_v58 = vpop.eup %626  ;;  %v242_v59 = vadd.f32 1.0, %v822_v56  ;;  %v245_v6 = vmul.f32 -0.5, %v822_v56  ;;  %v248_v21 = vand.u32 2147483647, %v822_v56  ;;  %v237_v33 = vadd.f32 1.0, %v236_v10 }
  0xe4   :  { %v629_v60 = vpop.eup %628  ;;  %v197_v0 = vadd.f32 1.0, %v825_v58  ;;  %v200_v4 = vmul.f32 -0.5, %v825_v58  ;;  %v203_v13 = vand.u32 2147483647, %v825_v58  ;;  %v219_v26 = vadd.f32 1.0, %v218_v7 }
  0xe5   :  { %v251_v62 = vadd.f32 1.0, %v629_v60  ;;  %636 = vlog2.f32 %v242_v59  ;;  %v254_v3 = vmul.f32 -0.5, %v629_v60  ;;  %v257_v20 = vand.u32 2147483647, %v629_v60 }
  0xe6   :  { %v631_v63 = vpop.eup %630  ;;  %638 = vlog2.f32 %v233_v57  ;;  %v201_v22 = vadd.f32 1.0, %v200_v4  ;;  %v246_v25 = vadd.f32 1.0, %v245_v6  ;;  %vm846_vm6 = vcmp.lt.f32.partialorder %v230_v12, 0.0004427343 }
  0xe7   :  { %v260_v2 = vadd.f32 1.0, %v631_v63  ;;  %640 = vlog2.f32 %v251_v62  ;;  %v263_v5 = vmul.f32 -0.5, %v631_v63  ;;  %v255_v19 = vadd.f32 1.0, %v254_v3 }
  0xe8   :  { %642 = vlog2.f32 %v215_v61  ;;  %v266_v31 = vand.u32 2147483647, %v631_v63  ;;  %vm850_vm7 = vcmp.lt.f32.partialorder %v239_v15, 0.0004427343  ;;  %vm854_vm8 = vcmp.lt.f32.partialorder %v257_v20, 0.0004427343  ;;  %v288_v15 = vpop.permute.xlu0 %287 }
  0xe9   :  { %644 = vlog2.f32 %v260_v2  ;;  %v264_v24 = vadd.f32 1.0, %v263_v5  ;;  %v256_v44 = vmul.f32 %v629_v60, %v255_v19  ;;  %vm858_vm9 = vcmp.lt.f32.partialorder %v248_v21, 0.0004427343  ;;  %v293_v21 = vpop.permute.xlu1 %292 }
  0xea   :  { %646 = vlog2.f32 %v197_v0  ;;  %v633_v9 = vpop.eup %632  ;;  %v247_v59 = vmul.f32 %v822_v56, %v246_v25  ;;  %vm267_vm10 = vcmp.lt.f32.partialorder %v266_v31, 0.0004427343  ;;  %v238_v60 = vmul.f32 %v817_v53, %v237_v33 }
  0xeb   :  { %v265_v57 = vmul.f32 %v631_v63, %v264_v24  ;;  %v229_v4 = vmul.f32 %v814_v51, %v228_v35  ;;  %v208_v5 = vmul.f32 0.6931472, %v633_v9  ;;  %v220_v6 = vmul.f32 %v820_v55, %v219_v26 }
  0xec   :  { %vm880_vm11 = vcmp.lt.f32.partialorder %v221_v16, 0.0004427343  ;;  %vm903_vm14 = vcmp.lt.f32.partialorder %v203_v13, 0.0004427343  ;;  %v277_v13 = vld [vmem:[%s1054_s3] sm:$0xff] }
  0xee   :  { %v635_v14 = vpop.eup %634 }
  0xef   :  { %v226_v61 = vmul.f32 0.6931472, %v635_v14 }
  0xf1   :  { %v232_v8 = vsel %vm846_vm6, %v229_v4, %v226_v61 }
  0xf2   :  { %v637_v18 = vpop.eup %636  ;;  %v272_v12 = vsel %vm176_vm13, %v793_v32, %v232_v8 }
  0xf3   :  { %v639_v23 = vpop.eup %638  ;;  %v244_v40 = vmul.f32 0.6931472, %v637_v18 }
  0xf4   :  { %v641_v29 = vpop.eup %640  ;;  %v235_v49 = vmul.f32 0.6931472, %v639_v23 }
  0xf5   :  { %v643_v38 = vpop.eup %642  ;;  %v253_v39 = vmul.f32 0.6931472, %v641_v29  ;;  %v250_v3 = vsel %vm858_vm9, %v247_v59, %v244_v40 }
  0xf6   :  { %v645_v43 = vpop.eup %644  ;;  %v217_v0 = vmul.f32 0.6931472, %v643_v38  ;;  %v241_v56 = vsel %vm850_vm7, %v238_v60, %v235_v49  ;;  %v274_v55 = vsel %vm178_vm4, %v802_v41, %v250_v3 }
  0xf7   :  { %v647_v52 = vpop.eup %646  ;;  %v262_v54 = vmul.f32 0.6931472, %v645_v43  ;;  %v259_v62 = vsel %vm854_vm8, %v256_v44, %v253_v39  ;;  %v273_v11 = vsel %vm177_vm5, %v798_v37, %v241_v56  ;;  %v303_v39 = vpop.permute.xlu1 %302 }
  0xf8   :  { %v199_v7 = vmul.f32 0.6931472, %v647_v52  ;;  %v275_v53 = vsel %vm179_vm3, %v806_v45, %v259_v62  ;;  %v223_v9 = vsel %vm880_vm11, %v220_v6, %v217_v0  ;;  %v202_v45 = vmul.f32 %v825_v58, %v201_v22 }
  0xf9   :  { %v268_v2 = vsel %vm267_vm10, %v265_v57, %v262_v54  ;;  %v271_v37 = vsel %vm175_vm15, %v791_v30, %v223_v9  ;;  %v278_v30 = vld [vmem:[%s1054_s3 + $0x8] sm:$0xff] }
  0xfa   :  { %v276_v63 = vsel %vm180_vm2, %v809_v48, %v268_v2  ;;  %v211_v48 = vmul.f32 %v812_v50, %v210_v28  ;;  %v205_v14 = vsel %vm903_vm14, %v202_v45, %v199_v7  ;;  %vm305_vm2 = vcmask 261120   ;;  %v298_v28 = vpop.permute.xlu0 %297 }
  0xfb   :  { %342 = vmatprep.subr.mxu1 %v276_v63  ;;  %v269_v32 = vsel %vm173_vm1, %v795_v34, %v205_v14  ;;  %v280_v34 = vld [vmem:[%s1054_s3 + $0x18] sm:$0xff] }
  0xfc   :  { %343 = vmatpush1.msra.mxu1 %v275_v53  ;;  %v214_v50 = vsel %vm890_vm12, %v211_v48, %v208_v5 }
  0xfd   :  { %344 = vmatprep.subr.mxu1 %v274_v55  ;;  %v270_v58 = vsel %vm174_vm0, %v788_v27, %v214_v50  ;;  %v279_v27 = vld [vmem:[%s1054_s3 + $0x10] sm:$0xff] }
  0xfe   :  { %345 = vmatpush1.msra.mxu1 %v273_v11 }
  0xff   :  { %346 = vmatprep.subr.mxu1 %v272_v12 }
 0x100   :  { %347 = vmatpush1.msra.mxu1 %v271_v37 }
 0x101   :  { %348 = vmatprep.subr.mxu1 %v270_v58 }
 0x102   :  { %349 = vmatpush1.msra.mxu1 %v269_v32 }
 0x103   :  { %607 = vmatmul.mubr.msk.f32.vlgmr.msra.gmra.mxu1 %vm305_vm2, %v277_v13 }
 0x104   :  { %388 = vmatprep.mubr.f32.mxu1 %v680_v1 }
 0x107   :  { %608 = vmatmul.mubr.msk.f32.gmra.mxu1 %vm305_vm2, %v278_v30 }
 0x108   :  { %394 = vmatprep.mubr.f32.mxu1 %v680_v1 }
 0x10b   :  { %609 = vmatmul.mubr.msk.f32.gmra.mxu1 %vm305_vm2, %v279_v27 }
 0x10c   :  { %400 = vmatprep.mubr.f32.mxu1 %v680_v1 }
 0x10f   :  { %610 = vmatmul.mubr.msk.f32.gmra.mxu1 %vm305_vm2, %v280_v34 }
 0x1c3   :  { %v384_v16 = vpop.f32.mrf.mxu1 }
 0x1c4   :  { %v931_v17 = vadd.f32 %v384_v16, %v288_v15 }
 0x1c5   :  { %v386_v18 = vpop.f32.mrf.mxu1 }
 0x1c6   :  { %v415_v19 = vmul.f32 1.442695, %v931_v17  ;;  %v934_v20 = vadd.f32 %v386_v18, %v288_v15  ;;  %vm407_vm3 = vcmp.gt.f32.partialorder %v931_v17, 20.0 }
 0x1c7   :  { %v390_v22 = vpop.f32.mrf.mxu1 }
 0x1c8   :  { %648 = vpow2.f32 %v415_v19  ;;  %v417_v23 = vmul.f32 1.442695, %v934_v20  ;;  %v937_v1 = vadd.f32 %v390_v22, %v293_v21  ;;  %vm408_vm6 = vcmp.gt.f32.partialorder %v934_v20, 20.0 }
 0x1c9   :  { %v392_v24 = vpop.f32.mrf.mxu1 }
 0x1ca   :  { %650 = vpow2.f32 %v417_v23  ;;  %v419_v25 = vmul.f32 1.442695, %v937_v1  ;;  %v940_v26 = vadd.f32 %v392_v24, %v293_v21  ;;  %vm409_vm4 = vcmp.gt.f32.partialorder %v937_v1, 20.0 }
 0x1cb   :  { %v396_v29 = vpop.f32.mrf.mxu1 }
 0x1cc   :  { %652 = vpow2.f32 %v419_v25  ;;  %v421_v31 = vmul.f32 1.442695, %v940_v26  ;;  %v943_v33 = vadd.f32 %v396_v29, %v298_v28  ;;  %vm410_vm7 = vcmp.gt.f32.partialorder %v940_v26, 20.0 }
 0x1cd   :  { %v398_v35 = vpop.f32.mrf.mxu1 }
 0x1ce   :  { %654 = vpow2.f32 %v421_v31  ;;  %v423_v36 = vmul.f32 1.442695, %v943_v33  ;;  %v946_v38 = vadd.f32 %v398_v35, %v298_v28  ;;  %vm411_vm9 = vcmp.gt.f32.partialorder %v943_v33, 20.0  ;;  %v518_v31 = vpop.permute.xlu0 %517 }
 0x1cf   :  { %v402_v40 = vpop.f32.mrf.mxu1 }
 0x1d0   :  { %656 = vpow2.f32 %v423_v36  ;;  %v425_v42 = vmul.f32 1.442695, %v946_v38  ;;  %v949_v43 = vadd.f32 %v402_v40, %v303_v39  ;;  %vm412_vm11 = vcmp.gt.f32.partialorder %v946_v38, 20.0 }
 0x1d1   :  { %v404_v44 = vpop.f32.mrf.mxu1 }
 0x1d2   :  { %658 = vpow2.f32 %v425_v42  ;;  %v427_v46 = vmul.f32 1.442695, %v949_v43  ;;  %v952_v47 = vadd.f32 %v404_v44, %v303_v39  ;;  %vm413_vm14 = vcmp.gt.f32.partialorder %v949_v43, 20.0 }
 0x1d4   :  { %660 = vpow2.f32 %v427_v46  ;;  %v429_v49 = vmul.f32 1.442695, %v952_v47  ;;  %vm414_vm1 = vcmp.gt.f32.partialorder %v952_v47, 20.0 }
 0x1d5   :  { %v649_v52 = vpop.eup %648 }
 0x1d6   :  { %v431_v54 = vadd.f32 1.0, %v649_v52  ;;  %662 = vpow2.f32 %v429_v49  ;;  %v434_v5 = vmul.f32 -0.5, %v649_v52  ;;  %v437_v7 = vand.u32 2147483647, %v649_v52 }
 0x1d7   :  { %v651_v57 = vpop.eup %650 }
 0x1d8   :  { %664 = vlog2.f32 %v431_v54  ;;  %v440_v59 = vadd.f32 1.0, %v651_v57  ;;  %v443_v6 = vmul.f32 -0.5, %v651_v57  ;;  %v435_v48 = vadd.f32 1.0, %v434_v5 }
 0x1d9   :  { %v653_v61 = vpop.eup %652  ;;  %v446_v55 = vand.u32 2147483647, %v651_v57  ;;  %vm970_vm5 = vcmp.lt.f32.partialorder %v437_v7, 0.0004427343 }
 0x1da   :  { %666 = vlog2.f32 %v440_v59  ;;  %v449_v62 = vadd.f32 1.0, %v653_v61  ;;  %v452_v53 = vmul.f32 -0.5, %v653_v61  ;;  %v444_v11 = vadd.f32 1.0, %v443_v6 }
 0x1db   :  { %v655_v60 = vpop.eup %654  ;;  %v455_v14 = vand.u32 2147483647, %v653_v61  ;;  %v436_v30 = vmul.f32 %v649_v52, %v435_v48  ;;  %vm977_vm8 = vcmp.lt.f32.partialorder %v446_v55, 0.0004427343 }
 0x1dc   :  { %668 = vlog2.f32 %v449_v62  ;;  %v458_v0 = vadd.f32 1.0, %v655_v60  ;;  %v461_v9 = vmul.f32 -0.5, %v655_v60  ;;  %v453_v12 = vadd.f32 1.0, %v452_v53 }
 0x1dd   :  { %v955_v2 = vpop.eup %656  ;;  %v464_v13 = vand.u32 2147483647, %v655_v60  ;;  %v445_v19 = vmul.f32 %v651_v57, %v444_v11  ;;  %vm984_vm10 = vcmp.lt.f32.partialorder %v455_v14, 0.0004427343 }
 0x1de   :  { %670 = vlog2.f32 %v458_v0  ;;  %v467_v3 = vadd.f32 1.0, %v955_v2  ;;  %v470_v50 = vmul.f32 -0.5, %v955_v2  ;;  %v462_v34 = vadd.f32 1.0, %v461_v9  ;;  %v528_v9 = vpop.permute.xlu0 %527 }
 0x1df   :  { %v958_v4 = vpop.eup %658  ;;  %v473_v15 = vand.u32 2147483647, %v955_v2  ;;  %v454_v24 = vmul.f32 %v653_v61, %v453_v12  ;;  %vm992_vm12 = vcmp.lt.f32.partialorder %v464_v13, 0.0004427343 }
 0x1e0   :  { %672 = vlog2.f32 %v467_v3  ;;  %v476_v63 = vadd.f32 1.0, %v958_v4  ;;  %v479_v32 = vmul.f32 -0.5, %v958_v4  ;;  %v471_v21 = vadd.f32 1.0, %v470_v50 }
 0x1e1   :  { %v961_v56 = vpop.eup %660  ;;  %v482_v28 = vand.u32 2147483647, %v958_v4  ;;  %v463_v46 = vmul.f32 %v655_v60, %v462_v34  ;;  %vm999_vm13 = vcmp.lt.f32.partialorder %v473_v15, 0.0004427343 }
 0x1e2   :  { %674 = vlog2.f32 %v476_v63  ;;  %v485_v8 = vadd.f32 1.0, %v961_v56  ;;  %v488_v22 = vmul.f32 -0.5, %v961_v56  ;;  %v480_v39 = vadd.f32 1.0, %v479_v32  ;;  %v523_v63 = vpop.permute.xlu1 %522  ;;  %v565_v49 = vpop.permute.xlu0 %564 }
 0x1e3   :  { %v964_v51 = vpop.eup %662  ;;  %v472_v59 = vmul.f32 %v955_v2, %v471_v21  ;;  %vm1015_vm15 = vcmp.lt.f32.partialorder %v482_v28, 0.0004427343  ;;  %v491_v6 = vand.u32 2147483647, %v961_v56 }
 0x1e4   :  { %676 = vlog2.f32 %v485_v8  ;;  %v494_v10 = vadd.f32 1.0, %v964_v51  ;;  %v497_v40 = vmul.f32 -0.5, %v964_v51  ;;  %v489_v61 = vadd.f32 1.0, %v488_v22 }
 0x1e5   :  { %v665_v45 = vpop.eup %664  ;;  %v481_v2 = vmul.f32 %v958_v4, %v480_v39  ;;  %vm492_vm0 = vcmp.lt.f32.partialorder %v491_v6, 0.0004427343  ;;  %v567_v22 = vlaneseq }
 0x1e6   :  { %678 = vlog2.f32 %v494_v10  ;;  %v433_v58 = vmul.f32 0.6931472, %v665_v45  ;;  %v498_v7 = vadd.f32 1.0, %v497_v40  ;;  %v490_v4 = vmul.f32 %v961_v56, %v489_v61 }
 0x1e7   :  { %v667_v37 = vpop.eup %666  ;;  %v500_v45 = vand.u32 2147483647, %v964_v51 }
 0x1e8   :  { %v442_v18 = vmul.f32 0.6931472, %v667_v37  ;;  %v439_v35 = vsel %vm970_vm5, %v436_v30, %v433_v58  ;;  %v499_v58 = vmul.f32 %v964_v51, %v498_v7  ;;  %v533_v30 = vpop.permute.xlu1 %532 }
 0x1e9   :  { %v669_v16 = vpop.eup %668  ;;  %v503_v62 = vsel %vm407_vm3, %v931_v17, %v439_v35  ;;  %vm501_vm2 = vcmp.lt.f32.partialorder %v500_v45, 0.0004427343  ;;  %v682_v35 = vmov 1966171168   ;;  %vm593_vm3 = vcmp.lt.s32.totalorder %v567_v22, 256 }
 0x1ea   :  { %v451_v23 = vmul.f32 0.6931472, %v669_v16  ;;  %v448_v54 = vsel %vm977_vm8, %v445_v19, %v442_v18  ;;  %v535_v10 = vmul.f32 %v518_v31, %v503_v62  ;;  %v577_v36 = vunpack.c.l.s4 %v682_v35 }
 0x1eb   :  { %v671_v29 = vpop.eup %670  ;;  %v504_v17 = vsel %vm408_vm6, %v934_v20, %v448_v54 }
 0x1ec   :  { %v457_v42 = vsel %vm984_vm10, %v454_v24, %v451_v23  ;;  %v460_v44 = vmul.f32 0.6931472, %v671_v29  ;;  %v536_v14 = vmul.f32 %v518_v31, %v504_v17  ;;  %v568_v29 = vshrl.u32 %v567_v22, 7 }
 0x1ed   :  { %v673_v52 = vpop.eup %672  ;;  %v505_v57 = vsel %vm409_vm4, %v937_v1, %v457_v42 }
 0x1ee   :  { %v466_v60 = vsel %vm992_vm12, %v463_v46, %v460_v44  ;;  %v469_v0 = vmul.f32 0.6931472, %v673_v52  ;;  %v537_v53 = vmul.f32 %v523_v63, %v505_v57  ;;  %v569_v42 = vsub.s32 0, %v568_v29 }
 0x1ef   :  { %v675_v5 = vpop.eup %674  ;;  %v506_v1 = vsel %vm410_vm7, %v940_v26, %v466_v60 }
 0x1f0   :  { %v475_v8 = vsel %vm999_vm13, %v472_v59, %v469_v0  ;;  %v478_v48 = vmul.f32 0.6931472, %v675_v5  ;;  %v538_v11 = vmul.f32 %v523_v63, %v506_v1  ;;  %v570_v57 = vrot.slane %v565_v49, %v569_v42 }
 0x1f1   :  { %v677_v55 = vpop.eup %676  ;;  %v507_v26 = vsel %vm411_vm9, %v943_v33, %v475_v8  ;;  %v543_v33 = vadd.f32 %v537_v53, %v535_v10 }
 0x1f2   :  { %v539_v50 = vmul.f32 %v528_v9, %v507_v26  ;;  %v484_v20 = vsel %vm1015_vm15, %v481_v2, %v478_v48  ;;  %v487_v41 = vmul.f32 0.6931472, %v677_v55  ;;  %v552_v34 = vadd.f32 %v538_v11, %v536_v14 }
 0x1f3   :  { %v679_v12 = vpop.eup %678  ;;  %v508_v37 = vsel %vm412_vm11, %v946_v38, %v484_v20 }
 0x1f4   :  { %v540_v13 = vmul.f32 %v528_v9, %v508_v37  ;;  %v493_v56 = vsel %vm492_vm0, %v490_v4, %v487_v41  ;;  %v496_v32 = vmul.f32 0.6931472, %v679_v12  ;;  %v544_v15 = vadd.f32 %v543_v33, %v539_v50 }
 0x1f5   :  { %v509_v27 = vsel %vm413_vm14, %v949_v43, %v493_v56 }
 0x1f6   :  { %v541_v16 = vmul.f32 %v533_v30, %v509_v27  ;;  %v502_v18 = vsel %vm501_vm2, %v499_v58, %v496_v32  ;;  %v553_v19 = vadd.f32 %v552_v34, %v540_v13 }
 0x1f7   :  { %v510_v38 = vsel %vm414_vm1, %v952_v47, %v502_v18  ;;  %v578_v47 = vunpack.c.0.s8 %v577_v36 }
 0x1f8   :  { %v545_v51 = vadd.f32 %v544_v15, %v541_v16  ;;  %v542_v21 = vmul.f32 %v533_v30, %v510_v38 }
 0x1f9   :  { %v581_v61 = vsub.s32 %v578_v47, %v568_v29 }
 0x1fa   :  { %v546_v23 = vrot.slane %v545_v51, 4  ;;  %v554_v24 = vadd.f32 %v553_v19, %v542_v21 }
 0x1fc   :  { %v547_v25 = vadd.f32 %v546_v23, %v545_v51  ;;  %v555_v28 = vrot.slane %v554_v24, 4 }
 0x1fe   :  { %v548_v31 = vrot.slane %v547_v25, 2  ;;  %v556_v43 = vadd.f32 %v555_v28, %v554_v24 }
 0x200   :  { %v549_v39 = vadd.f32 %v548_v31, %v547_v25  ;;  %v557_v40 = vrot.slane %v556_v43, 2 }
 0x202   :  { %v550_v44 = vrot.slane %v549_v39, 1  ;;  %v558_v46 = vadd.f32 %v557_v40, %v556_v43 }
 0x204   :  { %v551_v52 = vadd.f32 %v550_v44, %v549_v39  ;;  %v559_v54 = vrot.slane %v558_v46, 1 }
 0x206   :  { %v560_v59 = vadd.f32 %v559_v54, %v558_v46  ;;  %v571_v62 = vadd.f32 %v570_v57, %v551_v52 }
 0x208   :  { %v572_v60 = vadd.f32 %v570_v57, %v560_v59 }
 0x20a   :  { %v575_v0 = vcombine.low %v571_v62, %v572_v60 }
 0x20c   :  { %v582_v3 = vrot.slane %v575_v0, %v581_v61 }
 0x20e   :  { %v589_v5 = vrot.slane %v582_v3, %v581_v61 }
 0x210   :  { %595 = vst.msk [vmem:[%s1055_s7] sm:$0x3] %vm593_vm3, %v589_v5 }

</bundles_post_ra>
